<compile_context>
chip_gen: v5e
topology: v5e:2x2
jax: 0.10.0
libtpu: 0.0.40
codegen_flags: <defaults>
</compile_context>

<pallas_src>
import functools
import math

import numpy as np
import jax
import jax.numpy as jnp
from jax.experimental import pallas as pl
from jax.experimental.pallas import tpu as pltpu


def _round_up(x: int, m: int) -> int:
    return (x + m - 1) // m * m


def _cdiv(a: int, b: int) -> int:
    return (a + b - 1) // b


def _divisor_tiles(total: int, align: int, cap: int):
    """Multiples of `align` that divide `total`, descending, capped at `cap`."""
    cap = max(align, min(cap, total))
    cap = cap // align * align
    return [t for t in range(cap, align - 1, -align) if total % t == 0]


def _tpu_defaults():
    """(vmem_capacity_bytes, mxu_width) with conservative fallbacks (v7x VMEM, v5e MXU)."""
    vmem_cap = 64 * 1024 * 1024          # v7x per-TensorCore VMEM (smallest current gen)
    mxu_w = 128                          # v5e MXU width (v6e/v7x are 256-wide)
    try:
        info = pltpu.get_tpu_info()
        v = getattr(info, "vmem_capacity_bytes", None)
        if isinstance(v, int) and v > 0:
            vmem_cap = v
        for name in ("mxu_column_size", "mxu_size", "mxu_width"):
            m = getattr(info, name, None)
            if isinstance(m, int) and m > 0:
                mxu_w = m
                break
    except Exception:
        pass
    return vmem_cap, mxu_w


def _gcn_kernel(a_ref, x_ref, w_ref, bias_ref, o_ref, acc_ref, *,
                apply_weight: bool, resident_x: bool, tk: int):
    """acc += A_tile @ B_tile over the k grid axis (B = X, or X @ W computed in-kernel).

    k == 0    : zero the f32 accumulator.
    every k   : one MXU contraction of the (tm, tk) adjacency tile.
    k == last : optional f32 epilogue matmul with W (when the big contraction was
                re-associated as (A @ X) @ W), f32 bias add, single cast on store.
    """
    k = pl.program_id(1)

    @pl.when(k == 0)
    def _init():
        acc_ref[...] = jnp.zeros_like(acc_ref)

    if resident_x:
        start = pl.multiple_of(k * tk, tk)          # tk is a multiple of 128 on this path
        x_blk = x_ref[pl.ds(start, tk), :]
    else:
        x_blk = x_ref[...]

    if apply_weight:
        rhs = x_blk                                 # acc = A @ X ; W applied in the epilogue
    else:
        # Fused support tile: X_k @ W, recomputed per step (negligible vs. the A-tile DMA).
        rhs = jnp.dot(x_blk, w_ref[...],
                      preferred_element_type=jnp.float32).astype(a_ref.dtype)

    acc_ref[...] += jnp.dot(a_ref[...], rhs, preferred_element_type=jnp.float32)

    @pl.when(k == pl.num_programs(1) - 1)
    def _finalize():
        acc = acc_ref[...]
        if apply_weight:
            # Keep the epilogue matmul in f32 (cast W up, never the accumulator down).
            acc = jnp.dot(acc, w_ref[...].astype(jnp.float32),
                          preferred_element_type=jnp.float32)
        o_ref[...] = (acc + bias_ref[...]).astype(o_ref.dtype)


def gcn_layer(adjacency, input_feature, weight, bias=None, *,
              compute_dtype=None, tile_rows=None, tile_k=None, resident_features=None):
    """Fused GCN layer: adjacency @ (input_feature @ weight) + bias.

    compute_dtype      : dtype the adjacency/feature stream is cast to (default: input dtype).
                         bf16 halves HBM traffic on the dominant N x N read; accumulation and
                         the bias / weight epilogue stay in f32.
    tile_rows / tile_k : optional tile-size overrides (testing / tuning).
    resident_features  : force (True) or disable (False) the VMEM-resident X path.
    """
    N, Din = input_feature.shape
    Din_w, Dout = weight.shape
    assert Din_w == Din, (Din_w, Din)
    assert adjacency.shape == (N, N), adjacency.shape

    out_dtype = input_feature.dtype
    compute_dtype = np.dtype(out_dtype if compute_dtype is None else compute_dtype)
    itemsize = compute_dtype.itemsize
    out_itemsize = np.dtype(out_dtype).itemsize

    vmem_cap, mxu_w = _tpu_defaults()
    vmem_limit = max(32 * 1024 * 1024, min(vmem_cap * 3 // 4, 96 * 1024 * 1024))

    # ---- re-association: MXU-pass-based with a lane-density tie-break ------------------
    Dout_p = _round_up(Dout, 128)            # lane-dense accumulator / unmasked output stores
    p_in, p_out = _cdiv(Din, mxu_w), _cdiv(Dout_p, mxu_w)
    if p_in != p_out:
        apply_weight = p_in < p_out          # fewer MXU passes in the big N x N contraction
    else:
        apply_weight = (Din % 128 == 0) and (Din < Dout_p)
    Din_p = _round_up(Din, 128) if apply_weight else Din
    d_mid = Din_p if apply_weight else Dout_p

    # ---- tile selection (generation-gated) ---------------------------------------------
    tm_target = 512
    tk_target = 1024 if (itemsize <= 2 and vmem_cap >= 100 * 1024 * 1024) else 512

    if tile_k is not None:
        tk0 = int(tile_k)
        if tk0 >= N:
            Nk, tk_opts = N, [N]
        else:
            assert tk0 % 128 == 0, "tile_k must be a multiple of 128 (or >= N)"
            Nk, tk_opts = _round_up(N, tk0), [tk0]
    elif N <= tk_target:
        Nk, tk_opts = N, [N]                 # single k step, no column padding needed
    else:
        Nk = _round_up(N, 128)
        tk_opts = _divisor_tiles(Nk, 128, tk_target)

    if tile_rows is not None:
        tm0 = int(tile_rows)
        if tm0 >= _round_up(N, 8):
            Nm, tm_opts = _round_up(N, 8), [_round_up(N, 8)]
        else:
            assert tm0 % 8 == 0, "tile_rows must be a multiple of 8"
            Nm, tm_opts = _round_up(N, tm0), [tm0]
    else:
        Nm = _round_up(N, 8)
        tm_cap = tm_target
        if Nm >= 256:
            # Keep >= 2 row blocks so the "parallel" axis can shard across v7x's 2 TCs.
            tm_cap = min(tm_cap, _round_up(_cdiv(Nm, 2), 8))
        tm_opts = _divisor_tiles(Nm, 8, tm_cap)

    def _fits(tm_c, tk_c, resident):
        x_rows = Nk if resident else tk_c
        need = (2 * tm_c * tk_c * itemsize            # adjacency tiles (double-buffered)
                + 2 * x_rows * Din_p * itemsize       # X (conservatively 2 buffers)
                + 2 * Din_p * Dout_p * itemsize       # weight
                + 2 * Dout_p * 4                      # bias
                + tm_c * d_mid * 4                    # f32 accumulator scratch
                + 2 * tm_c * Dout_p * out_itemsize)   # output tiles
        return need <= int(vmem_limit * 0.85)

    residents = (True, False) if resident_features is None else (bool(resident_features),)
    choice = None
    for resident in residents:
        for tm_c in tm_opts:
            for tk_c in tk_opts:
                if _fits(tm_c, tk_c, resident):
                    choice = (tm_c, tk_c, resident)
                    break
            if choice is not None:
                break
        if choice is not None:
            break
    if choice is None:                       # pathological: smallest tiles, streamed X
        choice = (tm_opts[-1], tk_opts[-1], False)
    tm, tk, resident_x = choice
    if Nk == tk:
        # Single k step: the streamed spec already keeps X resident (constant index map)
        # and avoids the in-kernel dynamic slice.
        resident_x = False

    # ---- operand preparation (no pad copy when tiles divide N exactly) ------------------
    a_c = adjacency if adjacency.dtype == compute_dtype else adjacency.astype(compute_dtype)
    if (Nm, Nk) != (N, N):
        # TODO(synk): mask the ragged last row/k block in-kernel instead of this pad copy.
        a_p = jnp.zeros((Nm, Nk), compute_dtype).at[:N, :N].set(a_c)
    else:
        a_p = a_c

    x_c = (input_feature if input_feature.dtype == compute_dtype
           else input_feature.astype(compute_dtype))
    if (Nk, Din_p) != (N, Din):
        x_p = jnp.zeros((Nk, Din_p), compute_dtype).at[:N, :Din].set(x_c)
    else:
        x_p = x_c

    w_c = weight.astype(compute_dtype)
    if (Din_p, Dout_p) != (Din, Dout):
        w_p = jnp.zeros((Din_p, Dout_p), compute_dtype).at[:Din, :Dout].set(w_c)
    else:
        w_p = w_c

    if bias is None:
        bias_p = jnp.zeros((1, Dout_p), jnp.float32)
    elif Dout_p != Dout:
        bias_p = jnp.zeros((1, Dout_p), jnp.float32).at[0, :Dout].set(
            bias.astype(jnp.float32))
    else:
        bias_p = bias.reshape(1, Dout).astype(jnp.float32)

    grid = (Nm // tm, Nk // tk)
    if resident_x:
        x_spec = pl.BlockSpec((Nk, Din_p), lambda i, k: (0, 0))     # DMA'd once, VMEM-resident
    else:
        x_spec = pl.BlockSpec((tk, Din_p), lambda i, k: (k, 0))     # fallback: streamed per k

    flops = 2 * N * N * d_mid + 2 * N * Din * Dout
    x_passes = 1 if (resident_x or grid[1] == 1) else grid[0]
    bytes_accessed = int(a_p.size * itemsize + x_p.size * itemsize * x_passes
                         + w_p.size * itemsize + bias_p.size * 4
                         + Nm * Dout_p * out_itemsize)

    out_p = pl.pallas_call(
        functools.partial(_gcn_kernel, apply_weight=apply_weight,
                          resident_x=resident_x, tk=tk),
        out_shape=jax.ShapeDtypeStruct((Nm, Dout_p), out_dtype),
        grid_spec=pltpu.PrefetchScalarGridSpec(
            num_scalar_prefetch=0,
            grid=grid,
            in_specs=[
                pl.BlockSpec((tm, tk), lambda i, k: (i, k)),          # adjacency tile
                x_spec,                                               # features
                pl.BlockSpec((Din_p, Dout_p), lambda i, k: (0, 0)),   # weight
                pl.BlockSpec((1, Dout_p), lambda i, k: (0, 0)),       # bias (f32)
            ],
            out_specs=pl.BlockSpec((tm, Dout_p), lambda i, k: (i, 0)),
            scratch_shapes=[pltpu.VMEM((tm, d_mid), jnp.float32)],
        ),
        compiler_params=pltpu.CompilerParams(
            dimension_semantics=("parallel", "arbitrary"),
            vmem_limit_bytes=int(vmem_limit),
        ),
        cost_estimate=pl.CostEstimate(
            flops=int(flops), transcendentals=0, bytes_accessed=bytes_accessed),
    )(a_p, x_p, w_p, bias_p)

    if (Nm, Dout_p) != (N, Dout):
        out_p = out_p[:N, :Dout]
    return out_p


def kaiming_uniform(key, shape, dtype=jnp.float32):
    # Matches torch.nn.init.kaiming_uniform_ defaults closely enough for a demo.
    fan_in = shape[0]
    bound = math.sqrt(2.0) * math.sqrt(3.0 / fan_in)
    return jax.random.uniform(key, shape, dtype=dtype, minval=-bound, maxval=bound)


def _reference(adjacency, input_feature, weight, bias):
    hp = jax.lax.Precision.HIGHEST
    support = jnp.dot(input_feature, weight, precision=hp)
    out = jnp.dot(adjacency, support, precision=hp)
    if bias is not None:
        out = out + bias
    return out


if __name__ == "__main__":
    key = jax.random.PRNGKey(0)
    ks = jax.random.split(key, 12)

    # --- Primary shape: Din=64 < Dout=128 -> fused A @ (X @ W) path, lane-dense acc -----
    N, din, dout = 128, 64, 128
    adj = jax.random.uniform(ks[0], (N, N), dtype=jnp.float32)
    adj = adj / jnp.sum(adj, axis=1, keepdims=True)
    feat = jax.random.normal(ks[1], (N, din), dtype=jnp.float32)
    w = kaiming_uniform(ks[2], (din, dout))
    b = 0.1 * jax.random.normal(ks[3], (dout,), dtype=jnp.float32)

    ref = _reference(adj, feat, w, b)
    out = gcn_layer(adj, feat, w, b)
    jax.block_until_ready(out)
    assert out.shape == (N, dout)
    assert jnp.allclose(out, ref, atol=5e-3, rtol=5e-3), \
        float(jnp.max(jnp.abs(out - ref)))

    # bf16 adjacency stream (halves HBM traffic on the dominant N x N read), f32 accumulate.
    out_bf16 = gcn_layer(adj, feat, w, b, compute_dtype=jnp.bfloat16)
    jax.block_until_ready(out_bf16)
    assert jnp.allclose(out_bf16, ref, atol=5e-2, rtol=5e-2), \
        float(jnp.max(jnp.abs(out_bf16 - ref)))

    # No-bias path (use_bias=False in the PyTorch module).
    out_nb = gcn_layer(adj, feat, w, None)
    jax.block_until_ready(out_nb)
    assert jnp.allclose(out_nb, ref - b, atol=5e-3, rtol=5e-3)

    # --- Secondary shape: Dout=64 -> padded to a lane-dense 128-wide output; N=256 ------
    N2, din2, dout2 = 256, 192, 64
    adj2 = jax.random.uniform(ks[4], (N2, N2), dtype=jnp.float32)
    adj2 = adj2 / jnp.sum(adj2, axis=1, keepdims=True)
    feat2 = jax.random.normal(ks[5], (N2, din2), dtype=jnp.float32)
    w2 = kaiming_uniform(ks[6], (din2, dout2))
    b2 = 0.1 * jax.random.normal(ks[7], (dout2,), dtype=jnp.float32)

    ref2 = _reference(adj2, feat2, w2, b2)
    out2 = gcn_layer(adj2, feat2, w2, b2)
    jax.block_until_ready(out2)
    assert out2.shape == (N2, dout2)
    assert jnp.allclose(out2, ref2, atol=5e-3, rtol=5e-3), \
        float(jnp.max(jnp.abs(out2 - ref2)))

    # Forced small tiles: exercises the multi-step k reduction + resident-X slicing path.
    out2_t = gcn_layer(adj2, feat2, w2, b2, tile_rows=128, tile_k=128)
    jax.block_until_ready(out2_t)
    assert jnp.allclose(out2_t, ref2, atol=5e-3, rtol=5e-3)

    # Streamed-X fallback path (for graphs whose features don't fit the VMEM budget).
    out2_s = gcn_layer(adj2, feat2, w2, b2, tile_rows=128, tile_k=128,
                       resident_features=False)
    jax.block_until_ready(out2_s)
    assert jnp.allclose(out2_s, ref2, atol=5e-3, rtol=5e-3)

    # --- Third shape: Din=128 << Dout=512 -> (A @ X) @ W epilogue-weight path -----------
    N3, din3, dout3 = 128, 128, 512
    adj3 = jax.random.uniform(ks[8], (N3, N3), dtype=jnp.float32)
    adj3 = adj3 / jnp.sum(adj3, axis=1, keepdims=True)
    feat3 = jax.random.normal(ks[9], (N3, din3), dtype=jnp.float32)
    w3 = kaiming_uniform(ks[10], (din3, dout3))
    b3 = 0.1 * jax.random.normal(ks[11], (dout3,), dtype=jnp.float32)

    ref3 = _reference(adj3, feat3, w3, b3)
    out3 = gcn_layer(adj3, feat3, w3, b3)
    jax.block_until_ready(out3)
    assert out3.shape == (N3, dout3)
    assert jnp.allclose(out3, ref3, atol=5e-3, rtol=5e-3), \
        float(jnp.max(jnp.abs(out3 - ref3)))

    print("KERNEL_OK")
</pallas_src>

<mosaic_0001>
module attributes {stable_mosaic.version = 11 : i64} {
  func.func @_gcn_kernel(%arg0: i32, %arg1: i32, %arg2: memref<128x128xf32, #tpu.memory_space<vmem>>, %arg3: memref<128x64xf32, #tpu.memory_space<vmem>>, %arg4: memref<64x128xf32, #tpu.memory_space<vmem>>, %arg5: memref<1x128xf32, #tpu.memory_space<vmem>>, %arg6: memref<128x128xf32, #tpu.memory_space<vmem>>, %arg7: memref<128x128xf32, #tpu.memory_space<vmem>>) attributes {dimension_semantics = [#tpu.dimension_semantics<parallel>, #tpu.dimension_semantics<arbitrary>], iteration_bounds = array<i64: 1, 1>, scalar_prefetch = 0 : i64, scratch_operands = 1 : i64, tpu.core_type = #tpu.core_type<tc>, window_params = [{transform_indices = @transform_0, window_bounds = array<i64: 128, 128>}, {transform_indices = @transform_1, window_bounds = array<i64: 128, 64>}, {pipeline_mode = #tpu.pipeline_mode<synchronous>, transform_indices = @transform_2, window_bounds = array<i64: 64, 128>}, {pipeline_mode = #tpu.pipeline_mode<synchronous>, transform_indices = @transform_3, window_bounds = array<i64: 1, 128>}, {transform_indices = @transform_4, window_bounds = array<i64: 128, 128>}]} {
    %c0_i32 = arith.constant 0 : i32
    %0 = arith.cmpi eq, %arg1, %c0_i32 : i32
    %1 = arith.extui %0 : i1 to i32
    %c0_i32_0 = arith.constant 0 : i32
    %2 = arith.cmpi ne, %1, %c0_i32_0 : i32
    scf.if %2 {
      %cst_13 = arith.constant 0.000000e+00 : f32
      %14 = vector.broadcast %cst_13 : f32 to vector<128x128xf32>
      %c0_14 = arith.constant 0 : index
      %c0_15 = arith.constant 0 : index
      %15 = vector.load %arg7[%c0_14, %c0_15] : memref<128x128xf32, #tpu.memory_space<vmem>>, vector<128x128xf32>
      tpu.vector_store %arg7[%c0_14, %c0_15], %14 {strides = array<i32>} : memref<128x128xf32, #tpu.memory_space<vmem>>, vector<128x128xf32>,
    } else {
    }
    %c0 = arith.constant 0 : index
    %c0_1 = arith.constant 0 : index
    %3 = vector.load %arg3[%c0, %c0_1] : memref<128x64xf32, #tpu.memory_space<vmem>>, vector<128x64xf32>
    %c0_2 = arith.constant 0 : index
    %c0_3 = arith.constant 0 : index
    %4 = vector.load %arg4[%c0_2, %c0_3] : memref<64x128xf32, #tpu.memory_space<vmem>>, vector<64x128xf32>
    %cst = arith.constant dense<0.000000e+00> : vector<128x128xf32>
    %5 = tpu.matmul %3, %4, %cst {dimension_numbers = #tpu.dot_dimension_numbers<[1], [0], [0], [1], [0, 0, 1, 1], [], []>} : vector<128x64xf32>, vector<64x128xf32>, vector<128x128xf32> -> vector<128x128xf32>
    %c0_4 = arith.constant 0 : index
    %c0_5 = arith.constant 0 : index
    %6 = vector.load %arg7[%c0_4, %c0_5] : memref<128x128xf32, #tpu.memory_space<vmem>>, vector<128x128xf32>
    %c0_6 = arith.constant 0 : index
    %c0_7 = arith.constant 0 : index
    %7 = vector.load %arg2[%c0_6, %c0_7] : memref<128x128xf32, #tpu.memory_space<vmem>>, vector<128x128xf32>
    %cst_8 = arith.constant dense<0.000000e+00> : vector<128x128xf32>
    %8 = tpu.matmul %7, %5, %cst_8 {dimension_numbers = #tpu.dot_dimension_numbers<[1], [0], [0], [1], [0, 0, 1, 1], [], []>} : vector<128x128xf32>, vector<128x128xf32>, vector<128x128xf32> -> vector<128x128xf32>
    %9 = arith.addf %6, %8 : vector<128x128xf32>
    %c0_9 = arith.constant 0 : index
    %c0_10 = arith.constant 0 : index
    %10 = vector.load %arg7[%c0_9, %c0_10] : memref<128x128xf32, #tpu.memory_space<vmem>>, vector<128x128xf32>
    tpu.vector_store %arg7[%c0_9, %c0_10], %9 {strides = array<i32>} : memref<128x128xf32, #tpu.memory_space<vmem>>, vector<128x128xf32>,
    %c0_i32_11 = arith.constant 0 : i32
    %11 = arith.cmpi eq, %arg1, %c0_i32_11 : i32
    %12 = arith.extui %11 : i1 to i32
    %c0_i32_12 = arith.constant 0 : i32
    %13 = arith.cmpi ne, %12, %c0_i32_12 : i32
    scf.if %13 {
      %c0_13 = arith.constant 0 : index
      %c0_14 = arith.constant 0 : index
      %14 = vector.load %arg7[%c0_13, %c0_14] : memref<128x128xf32, #tpu.memory_space<vmem>>, vector<128x128xf32>
      %c0_15 = arith.constant 0 : index
      %c0_16 = arith.constant 0 : index
      %15 = vector.load %arg5[%c0_15, %c0_16] : memref<1x128xf32, #tpu.memory_space<vmem>>, vector<1x128xf32>
      %16 = vector.broadcast %15 : vector<1x128xf32> to vector<128x128xf32>
      %17 = arith.addf %14, %16 : vector<128x128xf32>
      %c0_17 = arith.constant 0 : index
      %c0_18 = arith.constant 0 : index
      %18 = vector.load %arg6[%c0_17, %c0_18] : memref<128x128xf32, #tpu.memory_space<vmem>>, vector<128x128xf32>
      tpu.vector_store %arg6[%c0_17, %c0_18], %17 {strides = array<i32>} : memref<128x128xf32, #tpu.memory_space<vmem>>, vector<128x128xf32>,
    } else {
    }
    return
  }
  func.func @transform_0(%arg0: i32, %arg1: i32) -> (i32, i32) {
    %c0_i32 = arith.constant 0 : i32
    return %arg0, %arg1 : i32, i32
  }
  func.func @transform_1(%arg0: i32, %arg1: i32) -> (i32, i32) {
    %c0_i32 = arith.constant 0 : i32
    %c0_i32_0 = arith.constant 0 : i32
    return %arg1, %c0_i32 : i32, i32
  }
  func.func @transform_2(%arg0: i32, %arg1: i32) -> (i32, i32) {
    %c0_i32 = arith.constant 0 : i32
    %c0_i32_0 = arith.constant 0 : i32
    %c0_i32_1 = arith.constant 0 : i32
    return %c0_i32, %c0_i32_0 : i32, i32
  }
  func.func @transform_3(%arg0: i32, %arg1: i32) -> (i32, i32) {
    %c0_i32 = arith.constant 0 : i32
    %c0_i32_0 = arith.constant 0 : i32
    %c0_i32_1 = arith.constant 0 : i32
    return %c0_i32, %c0_i32_0 : i32, i32
  }
  func.func @transform_4(%arg0: i32, %arg1: i32) -> (i32, i32) {
    %c0_i32 = arith.constant 0 : i32
    %c0_i32_0 = arith.constant 0 : i32
    return %arg0, %c0_i32 : i32, i32
  }
}

</mosaic_0001>

<bundles_post_ra>
// kernel: tpu_custom_call.1
= control target key start
LH: loop header
LB: loop body
LE: loop exit
PB: predicated region body
PF: predicated region fallthrough
CT: control target
= control target key end

     0   :  { %s639_s0 = inlined_call_operand.vmem [shape: f32[128,128], index: 0, kind: input, shape index: {}]   ;;  %s640_s1 = inlined_call_operand.vmem [shape: f32[128,64], index: 1, kind: input, shape index: {}]   ;;  %s641_s2 = inlined_call_operand.vmem [shape: f32[64,128], index: 2, kind: input, shape index: {}]   ;;  %s642_s3 = inlined_call_operand.vmem [shape: f32[1,128], index: 3, kind: input, shape index: {}]   ;;  %s643_s4 = inlined_call_operand.hbm [shape: f32[128,128], index: 4, kind: output, shape index: {}]  }
   0x1   :  { %v61_v0 = vld [vmem:[%s641_s2 + $0x38] sm:$0xff]  ;;  %v60_v1 = vld [vmem:[%s641_s2 + $0x30] sm:$0xff]  ;;  %v59_v2 = vld [vmem:[%s641_s2 + $0x28] sm:$0xff] }
   0x2   :  { %394 = vmatpush.msra.mxu3 %v61_v0  ;;  %119 = vmatpush.msra.mxu0 %v61_v0  ;;  %v58_v3 = vld [vmem:[%s641_s2 + $0x20] sm:$0xff] }
   0x4   :  { %395 = vmatpush.msra.mxu3 %v60_v1  ;;  %120 = vmatpush.msra.mxu0 %v60_v1 }
   0x6   :  { %396 = vmatpush.msra.mxu3 %v59_v2  ;;  %121 = vmatpush.msra.mxu0 %v59_v2 }
   0x7   :  { %9 = vsyncpa [#allocation4], 0  ;;  %v57_v4 = vld [vmem:[%s641_s2 + $0x18] sm:$0xff]  ;;  %v56_v5 = vld [vmem:[%s641_s2 + $0x10] sm:$0xff]  ;;  %vm62_vm0 = vcmask 523264   ;;  %s366_s16 = sshll.u32 %s643_s4, 4  ;;  %s367_s16 = int_to_ptr.hbm [resolvable:$true] %s366_s16 }
   0x8   :  { %397 = vmatpush.msra.mxu3 %v58_v3  ;;  %122 = vmatpush.msra.mxu0 %v58_v3  ;;  %v55_v6 = vld [vmem:[%s641_s2 + $0x8] sm:$0xff]  ;;  %v54_v7 = vld [vmem:[%s641_s2] sm:$0xff]  ;;  %v48_v10 = vld [vmem:[%s640_s1 + $0x50] sm:$0xff]  ;;  %s465_s17 = smov 128   ;;  %s466_s18 = smov 8  }
   0x9   :  { %v47_v8 = vld [vmem:[%s640_s1 + $0x48] sm:$0xff]  ;;  %v38_v9 = vld [vmem:[%s640_s1] sm:$0xff]  ;;  %v49_v12 = vld [vmem:[%s640_s1 + $0x58] sm:$0xff] }
   0xa   :  { %398 = vmatpush.msra.mxu3 %v57_v4  ;;  %123 = vmatpush.msra.mxu0 %v57_v4  ;;  %v39_v11 = vld [vmem:[%s640_s1 + $0x8] sm:$0xff]  ;;  %v40_v13 = vld [vmem:[%s640_s1 + $0x10] sm:$0xff]  ;;  %v50_v14 = vld [vmem:[%s640_s1 + $0x60] sm:$0xff] }
   0xb   :  { %v41_v15 = vld [vmem:[%s640_s1 + $0x18] sm:$0xff]  ;;  %v51_v16 = vld [vmem:[%s640_s1 + $0x68] sm:$0xff]  ;;  %v42_v17 = vld [vmem:[%s640_s1 + $0x20] sm:$0xff] }
   0xc   :  { %399 = vmatpush.msra.mxu3 %v56_v5  ;;  %124 = vmatpush.msra.mxu0 %v56_v5  ;;  %v52_v18 = vld [vmem:[%s640_s1 + $0x70] sm:$0xff]  ;;  %v43_v19 = vld [vmem:[%s640_s1 + $0x28] sm:$0xff]  ;;  %v53_v20 = vld [vmem:[%s640_s1 + $0x78] sm:$0xff] }
   0xd   :  { %v44_v21 = vld [vmem:[%s640_s1 + $0x30] sm:$0xff]  ;;  %v45_v22 = vld [vmem:[%s640_s1 + $0x38] sm:$0xff]  ;;  %v46_v23 = vld [vmem:[%s640_s1 + $0x40] sm:$0xff] }
   0xe   :  { %400 = vmatpush.msra.mxu3 %v55_v6  ;;  %125 = vmatpush.msra.mxu0 %v55_v6  ;;  %v199_v40 = vld [vmem:[%s639_s0 + $0x38] sm:$0xff]  ;;  %v192_v41 = vld [vmem:[%s639_s0] sm:$0xff]  ;;  %v193_v43 = vld [vmem:[%s639_s0 + $0x8] sm:$0xff] }
   0xf   :  { %v200_v42 = vld [vmem:[%s639_s0 + $0x40] sm:$0xff]  ;;  %v206_v44 = vld [vmem:[%s639_s0 + $0x70] sm:$0xff]  ;;  %v201_v45 = vld [vmem:[%s639_s0 + $0x48] sm:$0xff] }
  0x10   :  { %401 = vmatpush.msra.mxu3 %v54_v7  ;;  %126 = vmatpush.msra.mxu0 %v54_v7  ;;  %v194_v46 = vld [vmem:[%s639_s0 + $0x10] sm:$0xff]  ;;  %v207_v47 = vld [vmem:[%s639_s0 + $0x78] sm:$0xff]  ;;  %v196_v51 = vld [vmem:[%s639_s0 + $0x20] sm:$0xff] }
  0x11   :  { %387 = vmatmul.msk.f32.vlgmr.msra.gmra.mxu3 %vm62_vm0, %v47_v8  ;;  %378 = vmatmul.msk.f32.vlgmr.msra.gmra.mxu0 %vm62_vm0, %v38_v9  ;;  %v202_v48 = vld [vmem:[%s639_s0 + $0x50] sm:$0xff]  ;;  %v195_v49 = vld [vmem:[%s639_s0 + $0x18] sm:$0xff]  ;;  %v204_v52 = vld [vmem:[%s639_s0 + $0x60] sm:$0xff] }
  0x12   :  { %v203_v50 = vld [vmem:[%s639_s0 + $0x58] sm:$0xff]  ;;  %v197_v53 = vld [vmem:[%s639_s0 + $0x28] sm:$0xff]  ;;  %v198_v55 = vld [vmem:[%s639_s0 + $0x30] sm:$0xff] }
  0x13   :  { %v205_v54 = vld [vmem:[%s639_s0 + $0x68] sm:$0xff]  ;;  %v437_v56 = vld [vmem:[%s642_s3] ss:$0 sm:$0xff]  ;;  %s464_s0 = smov [#allocation3]  }
  0x14   :  { %s364_s3 = sshll.u32 %s464_s0, 4  ;;  %s365_s3 = int_to_ptr.vmem [resolvable:$true] %s364_s3 }
  0x19   :  { %388 = vmatmul.msk.f32.gmra.mxu3 %vm62_vm0, %v48_v10  ;;  %379 = vmatmul.msk.f32.gmra.mxu0 %vm62_vm0, %v39_v11 }
  0x21   :  { %389 = vmatmul.msk.f32.gmra.mxu3 %vm62_vm0, %v49_v12  ;;  %380 = vmatmul.msk.f32.gmra.mxu0 %vm62_vm0, %v40_v13 }
  0x29   :  { %390 = vmatmul.msk.f32.gmra.mxu3 %vm62_vm0, %v50_v14  ;;  %381 = vmatmul.msk.f32.gmra.mxu0 %vm62_vm0, %v41_v15 }
  0x31   :  { %391 = vmatmul.msk.f32.gmra.mxu3 %vm62_vm0, %v51_v16  ;;  %382 = vmatmul.msk.f32.gmra.mxu0 %vm62_vm0, %v42_v17 }
  0x39   :  { %392 = vmatmul.msk.f32.gmra.mxu3 %vm62_vm0, %v52_v18  ;;  %383 = vmatmul.msk.f32.gmra.mxu0 %vm62_vm0, %v43_v19 }
  0x41   :  { %393 = vmatmul.msk.f32.gmra.mxu3 %vm62_vm0, %v53_v20  ;;  %384 = vmatmul.msk.f32.gmra.mxu0 %vm62_vm0, %v44_v21 }
  0x49   :  { %385 = vmatmul.msk.f32.gmra.mxu0 %vm62_vm0, %v45_v22 }
  0x51   :  { %386 = vmatmul.msk.f32.gmra.mxu0 %vm62_vm0, %v46_v23 }
  0x8e   :  { %v580_v24 = vpop.f32.mrf.mxu0 }
  0x94   :  { %v155_v25 = vpop.f32.mrf.mxu3 }
  0x96   :  { %v131_v26 = vpop.f32.mrf.mxu0 }
  0x9c   :  { %v158_v27 = vpop.f32.mrf.mxu3 }
  0x9e   :  { %v134_v28 = vpop.f32.mrf.mxu0 }
  0xa4   :  { %v161_v29 = vpop.f32.mrf.mxu3 }
  0xa6   :  { %v137_v30 = vpop.f32.mrf.mxu0 }
  0xac   :  { %v164_v31 = vpop.f32.mrf.mxu3 }
  0xae   :  { %v140_v32 = vpop.f32.mrf.mxu0 }
  0xb4   :  { %v167_v33 = vpop.f32.mrf.mxu3 }
  0xb6   :  { %v143_v34 = vpop.f32.mrf.mxu0 }
  0xbc   :  { %v170_v35 = vpop.f32.mrf.mxu3 }
  0xbe   :  { %v146_v36 = vpop.f32.mrf.mxu0 }
  0xc4   :  { %v173_v37 = vpop.f32.mrf.mxu3 }
  0xc5   :  { %208 = vmatpush.msra.mxu1 %v173_v37  ;;  %402 = vmatpush.msra.mxu2 %v173_v37 }
  0xc6   :  { %403 = vmatpush.msrb.mxu3 %v173_v37  ;;  %v149_v38 = vpop.f32.mrf.mxu0 }
  0xc7   :  { %209 = vmatpush.msra.mxu1 %v170_v35  ;;  %404 = vmatpush.msra.mxu2 %v170_v35 }
  0xc8   :  { %405 = vmatpush.msrb.mxu3 %v170_v35 }
  0xc9   :  { %210 = vmatpush.msra.mxu1 %v167_v33  ;;  %406 = vmatpush.msra.mxu2 %v167_v33 }
  0xca   :  { %407 = vmatpush.msrb.mxu3 %v167_v33 }
  0xcb   :  { %211 = vmatpush.msra.mxu1 %v164_v31  ;;  %408 = vmatpush.msra.mxu2 %v164_v31 }
  0xcc   :  { %409 = vmatpush.msrb.mxu3 %v164_v31 }
  0xcd   :  { %212 = vmatpush.msra.mxu1 %v161_v29  ;;  %410 = vmatpush.msra.mxu2 %v161_v29 }
  0xce   :  { %411 = vmatpush.msrb.mxu3 %v161_v29  ;;  %v152_v39 = vpop.f32.mrf.mxu0 }
  0xcf   :  { %213 = vmatpush.msra.mxu1 %v158_v27  ;;  %412 = vmatpush.msra.mxu2 %v158_v27 }
  0xd0   :  { %413 = vmatpush.msrb.mxu3 %v158_v27 }
  0xd1   :  { %214 = vmatpush.msra.mxu1 %v155_v25  ;;  %414 = vmatpush.msra.mxu2 %v155_v25 }
  0xd2   :  { %415 = vmatpush.msrb.mxu3 %v155_v25 }
  0xd3   :  { %215 = vmatpush.msra.mxu1 %v152_v39  ;;  %416 = vmatpush.msra.mxu2 %v152_v39 }
  0xd4   :  { %417 = vmatpush.msrb.mxu3 %v152_v39 }
  0xd5   :  { %216 = vmatpush.msra.mxu1 %v149_v38  ;;  %418 = vmatpush.msra.mxu2 %v149_v38 }
  0xd6   :  { %419 = vmatpush.msrb.mxu3 %v149_v38 }
  0xd7   :  { %217 = vmatpush.msra.mxu1 %v146_v36  ;;  %420 = vmatpush.msra.mxu2 %v146_v36 }
  0xd8   :  { %421 = vmatpush.msrb.mxu3 %v146_v36 }
  0xd9   :  { %218 = vmatpush.msra.mxu1 %v143_v34  ;;  %422 = vmatpush.msra.mxu2 %v143_v34 }
  0xda   :  { %423 = vmatpush.msrb.mxu3 %v143_v34 }
  0xdb   :  { %219 = vmatpush.msra.mxu1 %v140_v32  ;;  %424 = vmatpush.msra.mxu2 %v140_v32 }
  0xdc   :  { %425 = vmatpush.msrb.mxu3 %v140_v32 }
  0xdd   :  { %220 = vmatpush.msra.mxu1 %v137_v30  ;;  %426 = vmatpush.msra.mxu2 %v137_v30 }
  0xde   :  { %427 = vmatpush.msrb.mxu3 %v137_v30 }
  0xdf   :  { %221 = vmatpush.msra.mxu1 %v134_v28  ;;  %428 = vmatpush.msra.mxu2 %v134_v28 }
  0xe0   :  { %429 = vmatpush.msrb.mxu3 %v134_v28 }
  0xe1   :  { %222 = vmatpush.msra.mxu1 %v131_v26  ;;  %430 = vmatpush.msra.mxu2 %v131_v26 }
  0xe2   :  { %431 = vmatpush.msrb.mxu3 %v131_v26 }
  0xe3   :  { %223 = vmatpush.msra.mxu1 %v580_v24  ;;  %432 = vmatpush.msra.mxu2 %v580_v24 }
  0xe4   :  { %433 = vmatpush.msrb.mxu3 %v580_v24  ;;  %245 = vmatmul.f32.vlgmr.msra.gmra.mxu2 %v199_v40 }
  0xe5   :  { %224 = vmatmul.f32.vlgmr.msra.gmra.mxu1 %v192_v41  ;;  %266 = vmatmul.f32.vlgmr.msrb.gmra.mxu3 %v206_v44 }
  0xec   :  { %248 = vmatmul.f32.gmra.mxu2 %v200_v42 }
  0xed   :  { %227 = vmatmul.f32.gmra.mxu1 %v193_v43  ;;  %269 = vmatmul.f32.gmra.mxu3 %v207_v47 }
  0xf4   :  { %251 = vmatmul.f32.gmra.mxu2 %v201_v45 }
  0xf5   :  { %230 = vmatmul.f32.gmra.mxu1 %v194_v46 }
  0xfc   :  { %254 = vmatmul.f32.gmra.mxu2 %v202_v48 }
  0xfd   :  { %233 = vmatmul.f32.gmra.mxu1 %v195_v49 }
 0x104   :  { %257 = vmatmul.f32.gmra.mxu2 %v203_v50 }
 0x105   :  { %236 = vmatmul.f32.gmra.mxu1 %v196_v51 }
 0x10c   :  { %260 = vmatmul.f32.gmra.mxu2 %v204_v52 }
 0x10d   :  { %239 = vmatmul.f32.gmra.mxu1 %v197_v53 }
 0x114   :  { %263 = vmatmul.f32.gmra.mxu2 %v205_v54 }
 0x115   :  { %242 = vmatmul.f32.gmra.mxu1 %v198_v55 }
 0x162   :  { %v225_v57 = vpop.f32.mrf.mxu1 }
 0x163   :  { %v328_v58 = vadd.f32 %v437_v56, %v225_v57 }
 0x165   :  { %344 = vst [vmem:[#allocation3] sm:$0xff] %v328_v58 }
 0x167   :  { %v246_v59 = vpop.f32.mrf.mxu2 }
 0x168   :  { %v335_v60 = vadd.f32 %v437_v56, %v246_v59  ;;  %v267_v1 = vpop.f32.mrf.mxu3 }
 0x169   :  { %v342_v2 = vadd.f32 %v437_v56, %v267_v1 }
 0x16a   :  { %351 = vst [vmem:[#allocation3 + $0x38] sm:$0xff] %v335_v60  ;;  %v228_v61 = vpop.f32.mrf.mxu1 }
 0x16b   :  { %v329_v62 = vadd.f32 %v437_v56, %v228_v61  ;;  %358 = vst [vmem:[#allocation3 + $0x70] sm:$0xff] %v342_v2 }
 0x16d   :  { %345 = vst [vmem:[#allocation3 + $0x8] sm:$0xff] %v329_v62 }
 0x16f   :  { %v249_v63 = vpop.f32.mrf.mxu2 }
 0x170   :  { %v336_v0 = vadd.f32 %v437_v56, %v249_v63  ;;  %v270_v7 = vpop.f32.mrf.mxu3 }
 0x171   :  { %v343_v8 = vadd.f32 %v437_v56, %v270_v7 }
 0x172   :  { %352 = vst [vmem:[#allocation3 + $0x40] sm:$0xff] %v336_v0  ;;  %v231_v3 = vpop.f32.mrf.mxu1 }
 0x173   :  { %v330_v4 = vadd.f32 %v437_v56, %v231_v3  ;;  %359 = vst [vmem:[#allocation3 + $0x78] sm:$0xff] %v343_v8 }
 0x175   :  { %346 = vst [vmem:[#allocation3 + $0x10] sm:$0xff] %v330_v4 }
 0x177   :  { %v252_v5 = vpop.f32.mrf.mxu2 }
 0x178   :  { %v337_v6 = vadd.f32 %v437_v56, %v252_v5 }
 0x17a   :  { %353 = vst [vmem:[#allocation3 + $0x48] sm:$0xff] %v337_v6  ;;  %v234_v9 = vpop.f32.mrf.mxu1 }
 0x17b   :  { %v331_v10 = vadd.f32 %v437_v56, %v234_v9 }
 0x17d   :  { %347 = vst [vmem:[#allocation3 + $0x18] sm:$0xff] %v331_v10 }
 0x17f   :  { %v255_v11 = vpop.f32.mrf.mxu2 }
 0x180   :  { %v338_v12 = vadd.f32 %v437_v56, %v255_v11 }
 0x182   :  { %354 = vst [vmem:[#allocation3 + $0x50] sm:$0xff] %v338_v12  ;;  %v237_v13 = vpop.f32.mrf.mxu1 }
 0x183   :  { %v332_v14 = vadd.f32 %v437_v56, %v237_v13 }
 0x185   :  { %348 = vst [vmem:[#allocation3 + $0x20] sm:$0xff] %v332_v14 }
 0x187   :  { %v258_v15 = vpop.f32.mrf.mxu2 }
 0x188   :  { %v339_v16 = vadd.f32 %v437_v56, %v258_v15 }
 0x18a   :  { %355 = vst [vmem:[#allocation3 + $0x58] sm:$0xff] %v339_v16  ;;  %v240_v17 = vpop.f32.mrf.mxu1 }
 0x18b   :  { %v333_v18 = vadd.f32 %v437_v56, %v240_v17 }
 0x18d   :  { %349 = vst [vmem:[#allocation3 + $0x28] sm:$0xff] %v333_v18 }
 0x18f   :  { %v261_v19 = vpop.f32.mrf.mxu2 }
 0x190   :  { %v340_v20 = vadd.f32 %v437_v56, %v261_v19 }
 0x192   :  { %356 = vst [vmem:[#allocation3 + $0x60] sm:$0xff] %v340_v20  ;;  %v243_v21 = vpop.f32.mrf.mxu1 }
 0x193   :  { %v334_v22 = vadd.f32 %v437_v56, %v243_v21 }
 0x195   :  { %350 = vst [vmem:[#allocation3 + $0x30] sm:$0xff] %v334_v22 }
 0x197   :  { %v264_v23 = vpop.f32.mrf.mxu2 }
 0x198   :  { %v341_v24 = vadd.f32 %v437_v56, %v264_v23 }
 0x19a   :  { %357 = vst [vmem:[#allocation3 + $0x68] sm:$0xff] %v341_v24 }
 0x19b   :  { %372 = dma.vmem_to_hbm [thread:$0]  %s365_s3, 2048, %s367_s16, [#allocation4], %s465_s17, %s465_s17, %s466_s18  }
 0x19c   :  { %462 = dma.done.wait [#allocation4], 2048  }
 0x19d   :  { %463 = vsyncadd [#allocation4], 4294965248 }
 0x19e   :  { %377 = vsyncpa [#allocation4], 1 }

</bundles_post_ra>
